<compile_context>
chip_gen: v5e
topology: v5e:2x2
jax: 0.10.0
libtpu: 0.0.40
codegen_flags: <defaults>
</compile_context>

<pallas_src>
import functools

import jax
import jax.numpy as jnp
from jax.experimental import pallas as pl
from jax.experimental.pallas import tpu as pltpu


_LANES = (8192, 4096, 2048, 1024, 512, 256, 128)   # lane-dense candidates
_TARGET_BLOCK_BYTES = 8 * 1024 * 1024              # ~8 MiB per buffer


def _gaussian_dropout_prng_kernel(seed_ref, x_ref, o_ref, *, alpha):
    """On-chip PRNG path (TPU): eps = N(0,1)*alpha + 1, out = x*eps (f32 math)."""
    # Seed with both key words plus the grid step so every tile draws an
    # independent stream (avoids correlated consecutive-integer seeds).
    pltpu.prng_seed(seed_ref[0], seed_ref[1], pl.program_id(0))
    noise = pltpu.stateful_normal(x_ref.shape, jnp.float32)
    eps = noise * alpha + 1.0
    o_ref[...] = (x_ref[...].astype(jnp.float32) * eps).astype(o_ref.dtype)


def _gaussian_dropout_noise_kernel(x_ref, n_ref, o_ref, *, alpha):
    """Portable fallback: noise precomputed outside; kernel fuses affine + mul."""
    eps = n_ref[...] * alpha + 1.0
    o_ref[...] = (x_ref[...].astype(jnp.float32) * eps).astype(o_ref.dtype)


def _plan_layout(total, itemsize):
    """Pick lane width, padding, and row blocking for `total` elements."""
    lane = None
    # Prefer the largest lane-dense width that divides `total` and keeps >= 8
    # rows (nice sublane utilization); else the largest that divides at all.
    for cand in _LANES:
        if total % cand == 0 and total // cand >= 8:
            lane = cand
            break
    if lane is None:
        for cand in _LANES:
            if total % cand == 0:
                lane = cand
                break
    pad = 0
    if lane is None:
        lane = 1024
        pad = (-total) % lane      # only pad when nothing divides cleanly
    rows = (total + pad) // lane

    target_rows = max(8, _TARGET_BLOCK_BYTES // (lane * itemsize))
    target_rows -= target_rows % 8               # keep (8, 128) divisibility
    if rows <= target_rows:
        block_rows, grid_rows = rows, 1          # block == full array (exempt)
    else:
        block_rows = target_rows                 # multiple of 8; partial last
        grid_rows = (rows + block_rows - 1) // block_rows  # block is fine
    return lane, pad, rows, block_rows, grid_rows


def _seed_words(key):
    """Two int32 seed words taken directly from the PRNG key (no extra op)."""
    if jnp.issubdtype(key.dtype, jax.dtypes.prng_key):
        data = jax.random.key_data(key)
    else:
        data = key
    data = jnp.asarray(data, dtype=jnp.uint32).reshape(-1)
    words = jnp.concatenate([data, data])[-2:]
    return jax.lax.bitcast_convert_type(words, jnp.int32)


def gaussian_dropout(x, key, alpha=1.0):
    """out = x * eps with eps ~ N(1, alpha^2), matching the PyTorch module."""
    orig_shape = x.shape
    total = x.size
    itemsize = jnp.dtype(x.dtype).itemsize
    lane, pad, rows, block_rows, grid_rows = _plan_layout(total, itemsize)

    flat = x.reshape(-1)
    if pad:  # only when no lane width divides `total` (rare for activations)
        flat = jnp.pad(flat, (0, pad))
    x2 = flat.reshape(rows, lane)

    block = (block_rows, lane)
    index_map = lambda i: (i, 0)
    alpha = float(alpha)

    if jax.default_backend() == "tpu":
        # Noise generated on-chip: only read x and write out.
        seed = _seed_words(key)
        out2 = pl.pallas_call(
            functools.partial(_gaussian_dropout_prng_kernel, alpha=alpha),
            out_shape=jax.ShapeDtypeStruct(x2.shape, x.dtype),
            grid=(grid_rows,),
            in_specs=[
                pl.BlockSpec(memory_space=pltpu.MemorySpace.SMEM),  # seed words
                pl.BlockSpec(block, index_map),                     # x tile
            ],
            out_specs=pl.BlockSpec(block, index_map),
            input_output_aliases={1: 0},            # reuse the activation buffer
            compiler_params=pltpu.CompilerParams(
                dimension_semantics=("parallel",),
                vmem_limit_bytes=48 * 1024 * 1024,  # 2x double-buffered 8 MiB tiles
            ),
        )(seed, x2)
    else:
        # Non-TPU fallback (interpret/CPU): the stateful hardware PRNG has no
        # lowering there, so precompute N(0,1) noise. Never taken on TPU.
        noise = jax.random.normal(key, x2.shape, dtype=jnp.float32)
        out2 = pl.pallas_call(
            functools.partial(_gaussian_dropout_noise_kernel, alpha=alpha),
            out_shape=jax.ShapeDtypeStruct(x2.shape, x.dtype),
            grid=(grid_rows,),
            in_specs=[pl.BlockSpec(block, index_map),
                      pl.BlockSpec(block, index_map)],
            out_specs=pl.BlockSpec(block, index_map),
        )(x2, noise)

    out_flat = out2.reshape(-1)
    if pad:
        out_flat = out_flat[:total]
    return out_flat.reshape(orig_shape)


if __name__ == "__main__":
    key = jax.random.PRNGKey(0)
    k_x, k_noise = jax.random.split(key)

    # NCHW activation, consistent with a conv-style feature map.
    x = jax.random.normal(k_x, (2, 4, 16, 16), dtype=jnp.float32)

    alpha = 1.0  # module default: GaussianDropout(alpha=1.0)
    y = gaussian_dropout(x, k_noise, alpha=alpha)
    y = jax.block_until_ready(y)

    # Sanity: shape/dtype preserved, values finite, noise actually applied.
    assert y.shape == x.shape and y.dtype == x.dtype
    assert bool(jnp.all(jnp.isfinite(y)))
    assert bool(jnp.any(y != x))

    print("KERNEL_OK")
</pallas_src>

<mosaic_0001>
module attributes {stable_mosaic.version = 11 : i64} {
  func.func @_gaussian_dropout_noise_kernel(%arg0: i32, %arg1: memref<8x256xf32, #tpu.memory_space<vmem>>, %arg2: memref<8x256xf32, #tpu.memory_space<vmem>>, %arg3: memref<8x256xf32, #tpu.memory_space<vmem>>) attributes {dimension_semantics = [#tpu.dimension_semantics<arbitrary>], iteration_bounds = array<i64: 1>, scalar_prefetch = 0 : i64, scratch_operands = 0 : i64, tpu.core_type = #tpu.core_type<tc>, window_params = [{transform_indices = @transform_0, window_bounds = array<i64: 8, 256>}, {transform_indices = @transform_1, window_bounds = array<i64: 8, 256>}, {transform_indices = @transform_2, window_bounds = array<i64: 8, 256>}]} {
    %c0 = arith.constant 0 : index
    %c0_0 = arith.constant 0 : index
    %0 = vector.load %arg2[%c0, %c0_0] : memref<8x256xf32, #tpu.memory_space<vmem>>, vector<8x256xf32>
    %cst = arith.constant 1.000000e+00 : f32
    %1 = vector.broadcast %cst : f32 to vector<8x256xf32>
    %2 = arith.mulf %0, %1 : vector<8x256xf32>
    %cst_1 = arith.constant 1.000000e+00 : f32
    %3 = vector.broadcast %cst_1 : f32 to vector<8x256xf32>
    %4 = arith.addf %2, %3 : vector<8x256xf32>
    %c0_2 = arith.constant 0 : index
    %c0_3 = arith.constant 0 : index
    %5 = vector.load %arg1[%c0_2, %c0_3] : memref<8x256xf32, #tpu.memory_space<vmem>>, vector<8x256xf32>
    %6 = arith.mulf %5, %4 : vector<8x256xf32>
    %c0_4 = arith.constant 0 : index
    %c0_5 = arith.constant 0 : index
    %7 = vector.load %arg3[%c0_4, %c0_5] : memref<8x256xf32, #tpu.memory_space<vmem>>, vector<8x256xf32>
    tpu.vector_store %arg3[%c0_4, %c0_5], %6 {strides = array<i32>} : memref<8x256xf32, #tpu.memory_space<vmem>>, vector<8x256xf32>,
    return
  }
  func.func @transform_0(%arg0: i32) -> (i32, i32) {
    %c0_i32 = arith.constant 0 : i32
    %c0_i32_0 = arith.constant 0 : i32
    return %arg0, %c0_i32 : i32, i32
  }
  func.func @transform_1(%arg0: i32) -> (i32, i32) {
    %c0_i32 = arith.constant 0 : i32
    %c0_i32_0 = arith.constant 0 : i32
    return %arg0, %c0_i32 : i32, i32
  }
  func.func @transform_2(%arg0: i32) -> (i32, i32) {
    %c0_i32 = arith.constant 0 : i32
    %c0_i32_0 = arith.constant 0 : i32
    return %arg0, %c0_i32 : i32, i32
  }
}

</mosaic_0001>

<bundles_post_ra>
// kernel: tpu_custom_call.1
= control target key start
LH: loop header
LB: loop body
LE: loop exit
PB: predicated region body
PF: predicated region fallthrough
CT: control target
= control target key end

     0   :  { %7 = vsyncpa [#allocation3], 0  ;;  %s176_s0 = inlined_call_operand.hbm [shape: f32[8,256], index: 0, kind: input, shape index: {}]   ;;  %s177_s1 = inlined_call_operand.hbm [shape: f32[8,256], index: 1, kind: input, shape index: {}]   ;;  %s178_s2 = inlined_call_operand.hbm [shape: f32[8,256], index: 2, kind: output, shape index: {}]  }
   0x1   :  { %8 = vsyncpa [#allocation6], 0 }
   0x2   :  { %9 = vsyncpa [#allocation4], 0  ;;  %s15_s11 = sshll.u32 %s176_s0, 4  ;;  %s149_s12 = smov [#allocation2]   ;;  %s16_s11 = int_to_ptr.hbm [resolvable:$true] %s15_s11 }
   0x3   :  { %s17_s13 = sshll.u32 %s149_s12, 4  ;;  %s26_s16 = sshll.u32 %s177_s1, 4  ;;  %s18_s13 = int_to_ptr.vmem [resolvable:$true] %s17_s13  ;;  %s27_s16 = int_to_ptr.hbm [resolvable:$true] %s26_s16 }
   0x4   :  { %20 = dma.hbm_to_vmem [thread:$0]  %s16_s11, 256, %s18_s13, [#allocation3]  }
   0x5   :  { %s150_s17 = smov [#allocation5]  }
   0x6   :  { %s28_s18 = sshll.u32 %s150_s17, 4  ;;  %s29_s18 = int_to_ptr.vmem [resolvable:$true] %s28_s18 }
   0x7   :  { %31 = dma.hbm_to_vmem [thread:$0]  %s27_s16, 256, %s29_s18, [#allocation6]  }
   0x8   :  { %143 = dma.done.wait [#allocation3], 256  }
   0x9   :  { %144 = vsyncadd [#allocation3], 4294967040 }
   0xa   :  { %145 = dma.done.wait [#allocation6], 256  }
   0xb   :  { %146 = vsyncadd [#allocation6], 4294967040  ;;  %v40_v0 = vld [vmem:[#allocation5] sm:$0xff]  ;;  %v44_v1 = vld [vmem:[#allocation2] sm:$0xff]  ;;  %s151_s0 = smov [#allocation7]   ;;  %s57_s21 = sshll.u32 %s178_s2, 4  ;;  %s58_s21 = int_to_ptr.hbm [resolvable:$true] %s57_s21 }
   0xc   :  { %v41_v2 = vld [vmem:[#allocation5 + $0x8] sm:$0xff]  ;;  %v42_v3 = vadd.f32 1.0, %v40_v0  ;;  %v45_v5 = vld [vmem:[#allocation2 + $0x8] sm:$0xff]  ;;  %s55_s19 = sshll.u32 %s151_s0, 4  ;;  %s56_s19 = int_to_ptr.vmem [resolvable:$true] %s55_s19 }
   0xd   :  { %v43_v4 = vadd.f32 1.0, %v41_v2 }
   0xe   :  { %v46_v6 = vmul.f32 %v44_v1, %v42_v3 }
   0xf   :  { %v47_v7 = vmul.f32 %v45_v5, %v43_v4 }
  0x10   :  { %48 = vst [vmem:[#allocation7] sm:$0xff] %v46_v6 }
  0x11   :  { %49 = vst [vmem:[#allocation7 + $0x8] sm:$0xff] %v47_v7 }
  0x12   :  { %60 = dma.vmem_to_hbm [thread:$0]  %s56_s19, 256, %s58_s21, [#allocation4]  }
  0x13   :  { %147 = dma.done.wait [#allocation4], 256  }
  0x14   :  { %148 = vsyncadd [#allocation4], 4294967040 }
  0x15   :  { %65 = vsyncpa [#allocation3], 1 }
  0x16   :  { %66 = vsyncpa [#allocation6], 1 }
  0x17   :  { %67 = vsyncpa [#allocation4], 1 }

</bundles_post_ra>
